<compile_context>
chip_gen: v7x
topology: tpu7x:2x2x1
jax: 0.10.0
libtpu: 0.0.40
codegen_flags: <defaults>
</compile_context>

<pallas_src>
import functools

import jax
import jax.numpy as jnp
from jax.experimental import pallas as pl
from jax.experimental.pallas import tpu as pltpu


def _patch_embed_kernel(p_ref, w_ref, pos_ref, o_ref):
    # p_ref:   (1, TM, K)   patch rows for one (batch, row-tile)
    # w_ref:   (K, TN)      projection weight tile (conv weight reshaped)
    # pos_ref: (TM, TN)     positional embedding + folded conv bias tile
    # o_ref:   (1, TM, TN)  output tile
    proj = jnp.dot(p_ref[0], w_ref[...],
                   preferred_element_type=jnp.float32)       # (TM, TN) f32
    o_ref[0, :, :] = (proj + pos_ref[...].astype(jnp.float32)).astype(o_ref.dtype)


def vit_patch_embeddings(x, conv_w, conv_b, pos_embed, patch_size,
                         compute_dtype=jnp.float32):
    """x: (B, C, H, W) float32, NCHW (PyTorch convention).

    conv_w:    (D, C, pH, pW)  (PyTorch Conv2d weight layout)
    conv_b:    (D,)
    pos_embed: (1, N, D)
    Returns:   (B, N, D) float32, N = ceil(H/pH) * ceil(W/pW)
    """
    pH, pW = patch_size
    B, C, H, W = x.shape
    D = conv_w.shape[0]

    # pad_to_patch (glue)
    pad_h = (pH - H % pH) % pH
    pad_w = (pW - W % pW) % pW
    x = jnp.pad(x, ((0, 0), (0, 0), (0, pad_h), (0, pad_w)))
    Hp, Wp = H + pad_h, W + pad_w
    nH, nW = Hp // pH, Wp // pW
    N = nH * nW
    K = C * pH * pW

    # Patch extraction: (B, C, nH, pH, nW, pW) -> (B, nH, nW, C, pH, pW) -> (B, N, K)
    patches = x.reshape(B, C, nH, pH, nW, pW)
    patches = patches.transpose(0, 2, 4, 1, 3, 5).reshape(B, N, K)
    patches = patches.astype(compute_dtype)

    # Conv weight -> matmul weight (K, D), PyTorch (c, ph, pw) flatten order.
    w_mat = conv_w.reshape(D, K).T.astype(compute_dtype)     # (K, D)
    # Fold the conv bias into the positional embedding (one fewer add + stream).
    pos_b = (pos_embed.reshape(N, D).astype(jnp.float32)
             + conv_b.reshape(1, D).astype(jnp.float32))     # (N, D) f32

    # Tile selection.
    #  - TM (patch rows): full N when small, else a multiple of 8 sublanes.
    #  - TN (embed dim):  full D when it fits, else a multiple of 128 lanes.
    # Full-extent blocks are always legal; tiled blocks satisfy (8, 128).
    TM = N if N <= 512 else 256
    TN = D if D <= 1024 else 512
    grid = (B, pl.cdiv(N, TM), pl.cdiv(D, TN))

    itemsize = jnp.dtype(compute_dtype).itemsize
    tile_bytes = (TM * K + K * TN) * itemsize + 2 * TM * TN * 4
    # Double-buffered pipeline needs ~2x; cap at v7x's 64 MiB physical VMEM.
    vmem_limit = int(min(max(4 * tile_bytes, 16 * 1024 * 1024),
                         64 * 1024 * 1024))

    cost = pl.CostEstimate(
        flops=2 * B * N * K * D,
        transcendentals=0,
        bytes_accessed=(patches.size * itemsize + w_mat.size * itemsize
                        + pos_b.size * 4 + B * N * D * 4),
    )

    return pl.pallas_call(
        _patch_embed_kernel,
        out_shape=jax.ShapeDtypeStruct((B, N, D), jnp.float32),
        grid_spec=pltpu.PrefetchScalarGridSpec(
            num_scalar_prefetch=0,
            grid=grid,
            in_specs=[
                pl.BlockSpec((1, TM, K), lambda b, i, j: (b, i, 0)),
                pl.BlockSpec((K, TN), lambda b, i, j: (0, j)),
                pl.BlockSpec((TM, TN), lambda b, i, j: (i, j)),
            ],
            out_specs=pl.BlockSpec((1, TM, TN), lambda b, i, j: (b, i, j)),
        ),
        compiler_params=pltpu.CompilerParams(
            dimension_semantics=("parallel", "parallel", "parallel"),
            vmem_limit_bytes=vmem_limit,
        ),
        cost_estimate=cost,
    )(patches, w_mat, pos_b)


def _reference(x, conv_w, conv_b, pos_embed, patch_size):
    """Pure-JAX reference of the PyTorch forward (conv via lax.conv)."""
    pH, pW = patch_size
    B, C, H, W = x.shape
    pad_h = (pH - H % pH) % pH
    pad_w = (pW - W % pW) % pW
    x = jnp.pad(x, ((0, 0), (0, 0), (0, pad_h), (0, pad_w)))
    y = jax.lax.conv_general_dilated(
        x, conv_w, window_strides=(pH, pW), padding="VALID",
        dimension_numbers=("NCHW", "OIHW", "NCHW"))
    y = y + conv_b.reshape(1, -1, 1, 1)
    B2, D, nH, nW = y.shape
    y = y.reshape(B2, D, nH * nW).transpose(0, 2, 1)  # flatten(2).transpose(1,2)
    return y + pos_embed


if __name__ == "__main__":
    # Small config consistent with the module:
    # img_size=16, patch_size=8, in_chans=4, embed_dim=32 -> num_patches=4
    img_size = (16, 16)
    patch_size = (8, 8)
    in_chans = 4
    embed_dim = 32
    num_patches = (img_size[0] // patch_size[0]) * (img_size[1] // patch_size[1])
    B = 2

    key = jax.random.PRNGKey(0)
    kx, kw, kb, kp = jax.random.split(key, 4)

    x = jax.random.normal(kx, (B, in_chans, img_size[0], img_size[1]),
                          dtype=jnp.float32)
    conv_w = jax.random.normal(
        kw, (embed_dim, in_chans, patch_size[0], patch_size[1]),
        dtype=jnp.float32) * 0.02
    conv_b = jax.random.normal(kb, (embed_dim,), dtype=jnp.float32) * 0.02
    # ViTPositionalEmbedding param shape (1, num_patches, embed_dim).
    # (module init is zeros; random here to exercise the add path)
    pos_embed = jax.random.normal(kp, (1, num_patches, embed_dim),
                                  dtype=jnp.float32) * 0.02

    out = vit_patch_embeddings(x, conv_w, conv_b, pos_embed, patch_size)
    out = jax.block_until_ready(out)

    ref = _reference(x, conv_w, conv_b, pos_embed, patch_size)
    assert out.shape == (B, num_patches, embed_dim), out.shape
    assert jnp.allclose(out, ref, atol=1e-4, rtol=1e-4), (
        float(jnp.max(jnp.abs(out - ref))))

    print("KERNEL_OK")
</pallas_src>

<mosaic_0001>
module attributes {stable_mosaic.version = 11 : i64} {
  func.func @_patch_embed_kernel(%arg0: i32, %arg1: i32, %arg2: i32, %arg3: memref<1x4x256xf32, #tpu.memory_space<vmem>>, %arg4: memref<256x32xf32, #tpu.memory_space<vmem>>, %arg5: memref<4x32xf32, #tpu.memory_space<vmem>>, %arg6: memref<1x4x32xf32, #tpu.memory_space<vmem>>) attributes {dimension_semantics = [#tpu.dimension_semantics<parallel>, #tpu.dimension_semantics<parallel>, #tpu.dimension_semantics<parallel>], iteration_bounds = array<i64: 2, 1, 1>, scalar_prefetch = 0 : i64, scratch_operands = 0 : i64, tpu.core_type = #tpu.core_type<tc>, window_params = [{transform_indices = @transform_0, window_bounds = array<i64: 1, 4, 256>}, {transform_indices = @transform_1, window_bounds = array<i64: 256, 32>}, {transform_indices = @transform_2, window_bounds = array<i64: 4, 32>}, {transform_indices = @transform_3, window_bounds = array<i64: 1, 4, 32>}]} {
    %c0 = arith.constant 0 : index
    %c0_0 = arith.constant 0 : index
    %c0_1 = arith.constant 0 : index
    %0 = vector.load %arg3[%c0, %c0_0, %c0_1] : memref<1x4x256xf32, #tpu.memory_space<vmem>>, vector<1x4x256xf32>
    %1 = vector.shape_cast %0 : vector<1x4x256xf32> to vector<4x256xf32>
    %c0_2 = arith.constant 0 : index
    %c0_3 = arith.constant 0 : index
    %2 = vector.load %arg4[%c0_2, %c0_3] : memref<256x32xf32, #tpu.memory_space<vmem>>, vector<256x32xf32>
    %cst = arith.constant dense<0.000000e+00> : vector<4x32xf32>
    %3 = tpu.matmul %1, %2, %cst {dimension_numbers = #tpu.dot_dimension_numbers<[1], [0], [0], [1], [0, 0, 1, 1], [], []>} : vector<4x256xf32>, vector<256x32xf32>, vector<4x32xf32> -> vector<4x32xf32>
    %c0_4 = arith.constant 0 : index
    %c0_5 = arith.constant 0 : index
    %4 = vector.load %arg5[%c0_4, %c0_5] : memref<4x32xf32, #tpu.memory_space<vmem>>, vector<4x32xf32>
    %5 = arith.addf %3, %4 : vector<4x32xf32>
    %c0_6 = arith.constant 0 : index
    %c0_7 = arith.constant 0 : index
    %c0_8 = arith.constant 0 : index
    %6 = vector.load %arg6[%c0_6, %c0_7, %c0_8] : memref<1x4x32xf32, #tpu.memory_space<vmem>>, vector<1x4x32xf32>
    %7 = vector.shape_cast %6 : vector<1x4x32xf32> to vector<4x32xf32>
    %8 = vector.shape_cast %5 : vector<4x32xf32> to vector<1x4x32xf32>
    tpu.vector_store %arg6[%c0_6, %c0_7, %c0_8], %8 {strides = array<i32>} : memref<1x4x32xf32, #tpu.memory_space<vmem>>, vector<1x4x32xf32>,
    return
  }
  func.func @transform_0(%arg0: i32, %arg1: i32, %arg2: i32) -> (i32, i32, i32) {
    %c0_i32 = arith.constant 0 : i32
    %c0_i32_0 = arith.constant 0 : i32
    return %arg0, %arg1, %c0_i32 : i32, i32, i32
  }
  func.func @transform_1(%arg0: i32, %arg1: i32, %arg2: i32) -> (i32, i32) {
    %c0_i32 = arith.constant 0 : i32
    %c0_i32_0 = arith.constant 0 : i32
    return %c0_i32, %arg2 : i32, i32
  }
  func.func @transform_2(%arg0: i32, %arg1: i32, %arg2: i32) -> (i32, i32) {
    %c0_i32 = arith.constant 0 : i32
    return %arg1, %arg2 : i32, i32
  }
  func.func @transform_3(%arg0: i32, %arg1: i32, %arg2: i32) -> (i32, i32, i32) {
    %c0_i32 = arith.constant 0 : i32
    return %arg0, %arg1, %arg2 : i32, i32, i32
  }
}

</mosaic_0001>

<bundles_post_ra>
// kernel: tpu_custom_call.1
= control target key start
LH: loop header
LB: loop body
LE: loop exit
PB: predicated region body
PF: predicated region fallthrough
CT: control target
= control target key end

     0   :  { %8 = vsyncpa [#allocation3], 0  ;;  %s940_s0 = inlined_call_operand.vmem [shape: f32[2,4,256], index: 0, kind: input, shape index: {}]   ;;  %s941_s1 = inlined_call_operand.vmem [shape: f32[256,32], index: 1, kind: input, shape index: {}]   ;;  %s942_s2 = inlined_call_operand.vmem [shape: f32[4,32], index: 2, kind: input, shape index: {}]   ;;  %s943_s3 = inlined_call_operand.hbm [shape: f32[2,4,32], index: 3, kind: output, shape index: {}]  }
   0x1   :  { %10 = vsyncpa [#allocation3 + $0x1], 0  ;;  %s729_s12 = smov 0   ;;  %s731_s13 = smov 0  }
   0x2   :  { %s733_s14 = smov 0   ;;  %s735_s15 = smov 0  }
   0x3   :  { %s737_s16 = smov 0   ;;  %s739_s17 = smov 0  }
   0x4 LB: > { %s490_s18 = sadd.s32 4294967295, %s706_s17   ;;  %s491_s19 = sadd.s32 4294967294, %s706_s17   ;;  %s706_s17 = sphi %s739_s17, %s16_s17   ;;  %s702_s16 = sphi %s737_s16, %s950_s16   ;;  %s698_s15 = sphi %s735_s15, %s949_s15   ;;  %s694_s14 = sphi %s733_s14, %s948_s14   ;;  %s690_s13 = sphi %s731_s13, %s947_s13   ;;  %s686_s12 = sphi %s729_s12, %s946_s12  }
   0x5   : > { %s35_s20 = sadd.s32 1, %s702_s16  ;;  %s128_s21 = sadd.s32 1, %s694_s14 }
   0x6   : > { %p37_p0 = scmp.ge.s32.totalorder %s35_s20, 2  ;;  %p138_p1 = scmp.ne.s32.totalorder %s694_s14, %s690_s13 }
   0x7   : > { %p139_p2 = scmp.eq.s32.totalorder %s490_s18, 1  ;;  %p144_p3 = scmp.ne.s32.totalorder %s690_s13, %s686_s12 }
   0x8   : > { %s952_s20 = smov (%p37_p0, %s35_s20), 0  ;;  %p145_p5 = scmp.eq.s32.totalorder %s491_s19, 1 }
   0x9   : > { %p769_p4 = por %p139_p2, %p138_p1  ;;  %s121_s23 = ssub.s32 %s702_s16, %s952_s20 }
   0xa   : > { %p496_p6 = scmp.ge.s32.totalorder %s706_s17, 1  ;;  %p126_p7 = scmp.eq.s32.totalorder %s121_s23, 0 }
   0xb   : > { %p776_p8 = por %p145_p5, %p144_p3  ;;  %p192_p9 = scmp.lt.s32.totalorder %s706_s17, 3 }
   0xc   : > { %s782_s25 = scalar_select %p126_p7, %s694_s14, %s128_s21  }
   0xd   : > { %p193_p10 = pnand %p496_p6, %p192_p9 }
   0xe   : > { %v268_v0 = vld [vmem:[%s941_s1 + $0x80] sm:$0xff] (!%p193_p10)  ;;  %v269_v1 = vld [vmem:[%s941_s1 + $0x88] sm:$0xff] (!%p193_p10)  ;;  %p231_p11 = scmp.lt.s32.totalorder (!%p193_p10), %s698_s15, 1  ;;  %v270_v5 = vld [vmem:[%s941_s1 + $0x90] sm:$0xff] (!%p193_p10)  ;;  %s501_s5 = sshll.u32 (!%p193_p10), %s698_s15, 6  ;;  %vm358_vm0 = vcmask (!%p193_p10), 257024  }
   0xf   : > { %196 = sbr.rel (%p193_p10) target bundleno = 280 (0x118), region = 32  ;;  %v252_v2 = vld [vmem:[%s941_s1] sm:$0xff] (!%p193_p10)  ;;  %v540_v3 = vpack.c.bf16 (!%p193_p10), %v269_v1, %v268_v0  ;;  %v253_v4 = vld [vmem:[%s941_s1 + $0x8] sm:$0xff] (!%p193_p10)  ;;  %v271_v6 = vld [vmem:[%s941_s1 + $0x98] sm:$0xff] (!%p193_p10)  ;;  %s893_s9 = scalar_lea.hbm (!%p193_p10), %s943_s3, %s501_s5 }
  0x10   : > { %v542_v7 = vpack.c.bf16 (!%p193_p10), %v253_v4, %v252_v2  ;;  %v544_v8 = vpack.c.bf16 (!%p193_p10), %v271_v6, %v270_v5  ;;  %v254_v9 = vld [vmem:[%s941_s1 + $0x10] sm:$0xff] (!%p193_p10)  ;;  %v255_v10 = vld [vmem:[%s941_s1 + $0x18] sm:$0xff] (!%p193_p10)  ;;  %v272_v11 = vld [vmem:[%s941_s1 + $0xa0] sm:$0xff] (!%p193_p10) }
  0x11   : > { %541 = vmatprep.subr.bf16.mxu0 (!%p193_p10), %v540_v3  ;;  %v273_v12 = vld [vmem:[%s941_s1 + $0xa8] sm:$0xff] (!%p193_p10)  ;;  %v546_v13 = vpack.c.bf16 (!%p193_p10), %v255_v10, %v254_v9  ;;  %v256_v15 = vld [vmem:[%s941_s1 + $0x20] sm:$0xff] (!%p193_p10)  ;;  %v274_v17 = vld [vmem:[%s941_s1 + $0xb0] sm:$0xff] (!%p193_p10) }
  0x12   : > { %543 = vmatpush3.bf16.msra.mxu0 (!%p193_p10), %v542_v7  ;;  %v548_v14 = vpack.c.bf16 (!%p193_p10), %v273_v12, %v272_v11  ;;  %v257_v16 = vld [vmem:[%s941_s1 + $0x28] sm:$0xff] (!%p193_p10)  ;;  %v275_v18 = vld [vmem:[%s941_s1 + $0xb8] sm:$0xff] (!%p193_p10)  ;;  %v258_v21 = vld [vmem:[%s941_s1 + $0x30] sm:$0xff] (!%p193_p10) }
  0x13   : > { %545 = vmatprep.subr.bf16.mxu0 (!%p193_p10), %v544_v8  ;;  %v550_v19 = vpack.c.bf16 (!%p193_p10), %v257_v16, %v256_v15  ;;  %v552_v20 = vpack.c.bf16 (!%p193_p10), %v275_v18, %v274_v17  ;;  %v259_v22 = vld [vmem:[%s941_s1 + $0x38] sm:$0xff] (!%p193_p10)  ;;  %v276_v23 = vld [vmem:[%s941_s1 + $0xc0] sm:$0xff] (!%p193_p10)  ;;  %v277_v24 = vld [vmem:[%s941_s1 + $0xc8] sm:$0xff] (!%p193_p10) }
  0x14   : > { %v554_v27 = vpack.c.bf16 (!%p193_p10), %v259_v22, %v258_v21  ;;  %v556_v28 = vpack.c.bf16 (!%p193_p10), %v277_v24, %v276_v23  ;;  %v260_v29 = vld [vmem:[%s941_s1 + $0x40] sm:$0xff] (!%p193_p10)  ;;  %v261_v30 = vld [vmem:[%s941_s1 + $0x48] sm:$0xff] (!%p193_p10)  ;;  %v278_v31 = vld [vmem:[%s941_s1 + $0xd0] sm:$0xff] (!%p193_p10) }
  0x15   : > { %v279_v32 = vld [vmem:[%s941_s1 + $0xd8] sm:$0xff] (!%p193_p10)  ;;  %v558_v33 = vpack.c.bf16 (!%p193_p10), %v261_v30, %v260_v29  ;;  %v262_v35 = vld [vmem:[%s941_s1 + $0x50] sm:$0xff] (!%p193_p10)  ;;  %v280_v37 = vld [vmem:[%s941_s1 + $0xe0] sm:$0xff] (!%p193_p10) }
  0x16   : > { %s232_s27 = scalar_select %p231_p11, %s698_s15, 1  ;;  %547 = vmatpush3.bf16.msra.mxu0 %v546_v13  ;;  %v560_v34 = vpack.c.bf16 %v279_v32, %v278_v31  ;;  %v263_v36 = vld [vmem:[%s941_s1 + $0x58] sm:$0xff]  ;;  %v281_v38 = vld [vmem:[%s941_s1 + $0xe8] sm:$0xff]  ;;  %v264_v41 = vld [vmem:[%s941_s1 + $0x60] sm:$0xff] }
  0x17   : > { %549 = vmatprep.subr.bf16.mxu0 %v548_v14  ;;  %v562_v39 = vpack.c.bf16 %v263_v36, %v262_v35  ;;  %v564_v40 = vpack.c.bf16 %v281_v38, %v280_v37  ;;  %v265_v42 = vld [vmem:[%s941_s1 + $0x68] sm:$0xff]  ;;  %v282_v43 = vld [vmem:[%s941_s1 + $0xf0] sm:$0xff]  ;;  %v283_v44 = vld [vmem:[%s941_s1 + $0xf8] sm:$0xff]  ;;  %s708_s15 = smov [#allocation2]  }
  0x18   : > { %s504_s30 = sshll.u32 %s232_s27, 3  ;;  %v566_v45 = vpack.c.bf16 %v265_v42, %v264_v41  ;;  %v568_v46 = vpack.c.bf16 %v283_v44, %v282_v43  ;;  %v266_v47 = vld [vmem:[%s941_s1 + $0x70] sm:$0xff]  ;;  %v267_v48 = vld [vmem:[%s941_s1 + $0x78] sm:$0xff]  ;;  %s228_s27 = sand.u32 1, %s690_s13   ;;  %v284_v51 = vld [vmem:[%s942_s2] sm:$0xf] }
  0x19   : > { %s239_s21 = scalar_lea.vmem %s940_s0, %s504_s30  ;;  %v570_v49 = vpack.c.bf16 %v267_v48, %v266_v47  ;;  %s497_s28 = sshll.u32 %s228_s27, 2 }
  0x1a   : > { %v251_v25 = vld [vmem:[%s239_s21] sm:$0xff]  ;;  %551 = vmatpush3.bf16.msra.mxu0 %v550_v19  ;;  %s230_s6 = scalar_lea.vmem [#allocation2], %s497_s28  ;;  %s361_s10 = scalar_lea.sflag [#allocation3], %s228_s27 }
  0x1b   : > { %v286_v26 = vcombine.high %v251_v25, %v251_v25  ;;  %553 = vmatprep.subr.bf16.mxu0 %v552_v20  ;;  %s376_s30 = sshll.u32 %s230_s6, 4  ;;  %s632_s18 = sshll.u32 %s708_s15, 4  ;;  %s895_s30 = int_to_ptr.vmem [resolvable:$true] %s376_s30  ;;  %s633_s18 = int_to_ptr.vmem [resolvable:$false] %s632_s18 }
  0x1c   : > { %s628_s11 = scalar_lea.vmem %s895_s30, 64  ;;  %s634_s19 = scalar_lea.vmem %s633_s18, 128 }
  0x1d   : > { %352 = vmatprep.mubr.f32.mxu0 %v286_v26  ;;  %p629_p12 = scmp.ne.s32.totalorder %s895_s30, %s628_s11  ;;  %p635_p1 = scmp.lt.s32.totalorder %s895_s30, %s633_s18 }
  0x1e   : > { %555 = vmatpush3.bf16.msra.mxu0 %v554_v27  ;;  %p636_p2 = scmp.lt.s32.totalorder %s634_s19, %s628_s11 }
  0x1f   : > { %557 = vmatprep.subr.bf16.mxu0 %v556_v28  ;;  %p630_p13 = pnand %p629_p12, %p769_p4 }
  0x20   : > { %p637_p3 = por %p636_p2, %p635_p1 }
  0x21   : > { %p631_p0 = pneg %p630_p13 }
  0x22   : > { %559 = vmatpush3.bf16.msra.mxu0 %v558_v33 }
  0x23   : > { %561 = vmatprep.subr.bf16.mxu0 %v560_v34  ;;  %p638_p5 = pnand %p637_p3, %p631_p0 }
  0x26   : > { %563 = vmatpush3.bf16.msra.mxu0 %v562_v39 }
  0x27   : > { %565 = vmatprep.subr.bf16.mxu0 %v564_v40 }
  0x2a   : > { %567 = vmatpush3.bf16.msra.mxu0 %v566_v45 }
  0x2b   : > { %569 = vmatprep.subr.bf16.mxu0 %v568_v46 }
  0x2e   : > { %571 = vmatpush3.bf16.msra.mxu0 %v570_v49 }
  0x31   : > { %353 = vmatmul.mubr.f32.vlgmr.msra.gmra.mrb[0].mxu0 %v251_v25 }
 0x104   : > { %v537_v50 = vpop.f32.mrb[0].mxu0 }
 0x105   : > { %v538_v52 = vpop.f32.mrb[1].mxu0 }
 0x106   : > { %v539_v53 = vadd.f32 %v538_v52, %v537_v50 }
 0x108   : > { %v355_v54 = vadd.f32 %v539_v53, %v284_v51 }
 0x10a   : > { %359 = vst.msk [vmem:[%s230_s6] sm:$0xf] %vm358_vm0, %v355_v54 }
 0x10b   : > { %641 = shalt.err (!%p638_p5)
}
 0x10c   : > { %s642_s21 = scalar_lea.hbm %s893_s9, 64  ;;  %s646_s27 = scalar_lea.hbm %s943_s3, 128 }
 0x10d   : > { %p643_p6 = scmp.ne.s32.totalorder %s893_s9, %s642_s21  ;;  %p647_p10 = scmp.lt.u32.totalorder %s893_s9, %s943_s3 }
 0x10e   : > { %p648_p11 = scmp.lt.u32.totalorder %s646_s27, %s642_s21  ;;  %p650_p13 = scmp.lt.u32.totalorder %s642_s21, %s893_s9 }
 0x10f   : > { %p644_p7 = pnand %p643_p6, %p769_p4 }
 0x110   : > { %p649_p12 = por %p648_p11, %p647_p10 }
 0x111   : > { %p645_p9 = pneg %p644_p7 }
 0x112   : > { %p651_p0 = por %p650_p13, %p649_p12 }
 0x114   : > { %p652_p1 = pnand %p651_p0, %p645_p9 }
 0x116   : > { %655 = shalt.err (!%p652_p1)
}
 0x117   : > { %572 = dma.vmem_to_hbm [thread:$0]  (%p769_p4), %s895_s30, 64, %s893_s9, %s361_s10  }
 0x118 PF: > { %p578_p2 = scmp.ge.s32.totalorder %s706_s17, 2  ;;  %s388_s4 = sand.u32 1, %s686_s12  }
 0x119   : > { %s389_s5 = scalar_lea.sflag [#allocation3], %s388_s4 }
 0x11a   : > { %p575_p3 = pnand %p578_p2, %p776_p8 }
 0x11c   : > { %681 = dma.done.wait (!%p575_p3), %s389_s5, 64  }
 0x11d   : > { %683 = vsyncadd (!%p575_p3), %s389_s5, 4294967232  ;;  %s16_s17 = sadd.s32 1, %s706_s17   ;;  %s946_s12 = smov %s690_s13 }
 0x11e   : > { %p13_p5 = scmp.ge.s32.totalorder %s16_s17, 4   ;;  %s947_s13 = smov %s694_s14 }
 0x11f   : > { %s948_s14 = smov %s782_s25  ;;  %s949_s15 = smov %s702_s16 }
 0x120   : > { %s950_s16 = smov %s952_s20  ;;  %15 = sbr.rel (!%p13_p5) target bundleno = 4 (0x4), region = 73 }
 0x127   :  { %394 = vsyncpa [#allocation3], 1 }
 0x128   :  { %396 = vsyncpa [#allocation3 + $0x1], 1 }

</bundles_post_ra>
